<compile_context>
chip_gen: v5e
topology: v5e:2x2
jax: 0.10.0
libtpu: 0.0.40
codegen_flags: <defaults>
</compile_context>

<pallas_src>
import math
import functools

import jax
import jax.numpy as jnp
import numpy as np
from jax import lax
from jax.experimental import pallas as pl
from jax.experimental.pallas import tpu as pltpu


def _cross_attention_kernel(x_ref, y_ref,
                            wq_ref, bq_ref,
                            wk_ref, bk_ref,
                            wv_ref, bv_ref,
                            wo_ref, bo_ref,
                            o_ref, *, num_heads, d_head):
    x = x_ref[0]          # (TQ, D)
    y = y_ref[0]          # (Lkv, Dc)

    # Fused full-width input projections (all heads at once, full-D MXU width).
    # The softmax scale 1/sqrt(dh) is already folded into wq/bq.
    q = jnp.dot(x, wq_ref[...], preferred_element_type=jnp.float32) + bq_ref[...]   # (TQ, D)
    k = jnp.dot(y, wk_ref[...], preferred_element_type=jnp.float32) + bk_ref[...]   # (Lkv, D)
    v = jnp.dot(y, wv_ref[...], preferred_element_type=jnp.float32) + bv_ref[...]   # (Lkv, D)

    # Per-head scaled-dot-product softmax attention; H is small & static,
    # so unroll with static slices.
    head_outs = []
    for h in range(num_heads):
        lo = h * d_head
        qh = q[:, lo:lo + d_head]     # (TQ, dh)
        kh = k[:, lo:lo + d_head]     # (Lkv, dh)
        vh = v[:, lo:lo + d_head]     # (Lkv, dh)

        # Contract the last dims of both operands directly: no k transpose.
        s = lax.dot_general(qh, kh, (((1,), (1,)), ((), ())),
                            preferred_element_type=jnp.float32)                     # (TQ, Lkv)
        m = jnp.max(s, axis=-1, keepdims=True)
        p = jnp.exp(s - m)
        l = jnp.sum(p, axis=-1, keepdims=True)                                      # (TQ, 1)

        # Un-normalized P @ V, then normalize on the small (TQ, dh) tile using
        # the EUP approximate reciprocal (VALU-free divide).
        oh = lax.dot_general(p.astype(vh.dtype), vh, (((1,), (0,)), ((), ())),
                             preferred_element_type=jnp.float32)                    # (TQ, dh)
        oh = oh * pl.reciprocal(l, approx=True)
        head_outs.append(oh)

    attn = jnp.concatenate(head_outs, axis=-1)                                      # (TQ, D)

    # Full-width output projection (one (TQ,D)x(D,D) matmul for all heads).
    out = jnp.dot(attn.astype(x.dtype), wo_ref[...],
                  preferred_element_type=jnp.float32) + bo_ref[...]
    o_ref[0] = out.astype(o_ref.dtype)


def cross_attention_pallas(x, y, params, num_heads):
    B, Lq, D = x.shape
    _, Lkv, Dc = y.shape
    dh = D // num_heads
    scale = 1.0 / math.sqrt(dh)

    # Pre-transpose weights to (in_features, out_features) so the kernel does
    # plain jnp.dot with the contraction dim lane-major, and fold the softmax
    # scale into the Q projection (completely free).
    wq_t = (params["wq"] * scale).T            # (D, D)
    bq_s = (params["bq"] * scale).reshape(1, D)
    wk_t = params["wk"].T                      # (Dc, D)
    bk = params["bk"].reshape(1, D)
    wv_t = params["wv"].T                      # (Dc, D)
    bv = params["bv"].reshape(1, D)
    wo_t = params["wo"].T                      # (D, D)
    bo = params["bo"].reshape(1, D)

    # Query-tile size: keeps resident (TQ, D) slabs VMEM-friendly at SD
    # sequence lengths (Lq=4096, D=320) while collapsing to a single step per
    # batch element for small Lq (avoids per-step ~0.35us grid overhead).
    TQ = 256 if Lq % 256 == 0 else Lq
    nq = Lq // TQ

    kernel = functools.partial(_cross_attention_kernel,
                               num_heads=num_heads, d_head=dh)

    def full(shape):
        return pl.BlockSpec(shape, lambda b, t: (0,) * len(shape))

    return pl.pallas_call(
        kernel,
        out_shape=jax.ShapeDtypeStruct((B, Lq, D), x.dtype),
        grid_spec=pltpu.PrefetchScalarGridSpec(
            num_scalar_prefetch=0,
            grid=(B, nq),
            in_specs=[
                pl.BlockSpec((1, TQ, D), lambda b, t: (b, t, 0)),     # x tile
                pl.BlockSpec((1, Lkv, Dc), lambda b, t: (b, 0, 0)),   # y (full context)
                full((D, D)),    # Wq^T (pre-scaled)
                full((1, D)),    # bq (pre-scaled)
                full((Dc, D)),   # Wk^T
                full((1, D)),    # bk
                full((Dc, D)),   # Wv^T
                full((1, D)),    # bv
                full((D, D)),    # Wo^T
                full((1, D)),    # bo
            ],
            out_specs=pl.BlockSpec((1, TQ, D), lambda b, t: (b, t, 0)),
        ),
        compiler_params=pltpu.CompilerParams(
            # Both axes are truly independent -> shard across TensorCores.
            dimension_semantics=("parallel", "parallel"),
            # Explicit scoped-VMEM budget, safe on v5e/v6e/v7x; leaves headroom
            # for double-buffered x/out tiles + resident weights at SD shapes.
            vmem_limit_bytes=32 * 1024 * 1024),
    )(x, y, wq_t, bq_s, wk_t, bk, wv_t, bv, wo_t, bo)


def cross_attention_reference(x, y, params, num_heads):
    """Pure-JAX transliteration of the PyTorch forward (for checking)."""
    B, Lq, D = x.shape
    dh = D // num_heads
    q = x @ params["wq"].T + params["bq"]
    k = y @ params["wk"].T + params["bk"]
    v = y @ params["wv"].T + params["bv"]

    def split(t):
        b, l, _ = t.shape
        return t.reshape(b, l, num_heads, dh).transpose(0, 2, 1, 3)

    q, k, v = split(q), split(k), split(v)
    w = jnp.einsum("bhqd,bhkd->bhqk", q, k) / math.sqrt(dh)
    w = jax.nn.softmax(w, axis=-1)
    o = jnp.einsum("bhqk,bhkd->bhqd", w, v)
    o = o.transpose(0, 2, 1, 3).reshape(B, Lq, D)
    return o @ params["wo"].T + params["bo"]


if __name__ == "__main__":
    # Small shapes consistent with the module's forward.
    B, Lq, Lkv = 2, 16, 8
    num_heads, d_embed, d_cross = 4, 32, 24

    key = jax.random.PRNGKey(0)
    keys = jax.random.split(key, 10)

    # Deterministic synthetic parameters (PyTorch Linear weight layout: (out, in)).
    params = {
        "wq": jax.random.normal(keys[0], (d_embed, d_embed), jnp.float32) * 0.1,
        "bq": jax.random.normal(keys[1], (d_embed,), jnp.float32) * 0.1,
        "wk": jax.random.normal(keys[2], (d_embed, d_cross), jnp.float32) * 0.1,
        "bk": jax.random.normal(keys[3], (d_embed,), jnp.float32) * 0.1,
        "wv": jax.random.normal(keys[4], (d_embed, d_cross), jnp.float32) * 0.1,
        "bv": jax.random.normal(keys[5], (d_embed,), jnp.float32) * 0.1,
        "wo": jax.random.normal(keys[6], (d_embed, d_embed), jnp.float32) * 0.1,
        "bo": jax.random.normal(keys[7], (d_embed,), jnp.float32) * 0.1,
    }

    x = jax.random.normal(keys[8], (B, Lq, d_embed), jnp.float32)
    y = jax.random.normal(keys[9], (B, Lkv, d_cross), jnp.float32)

    out = cross_attention_pallas(x, y, params, num_heads)
    out = jax.block_until_ready(out)

    ref = cross_attention_reference(x, y, params, num_heads)
    # Tolerance accounts for the EUP approximate reciprocal in the softmax
    # normalization (~1e-4 relative) on top of normal f32 matmul reordering.
    np.testing.assert_allclose(np.asarray(out), np.asarray(ref), rtol=2e-3, atol=2e-3)

    print("KERNEL_OK")
</pallas_src>

<mosaic_0001>
module attributes {stable_mosaic.version = 11 : i64} {
  func.func @_cross_attention_kernel(%arg0: i32, %arg1: i32, %arg2: memref<1x16x32xf32, #tpu.memory_space<vmem>>, %arg3: memref<1x8x24xf32, #tpu.memory_space<vmem>>, %arg4: memref<32x32xf32, #tpu.memory_space<vmem>>, %arg5: memref<1x32xf32, #tpu.memory_space<vmem>>, %arg6: memref<24x32xf32, #tpu.memory_space<vmem>>, %arg7: memref<1x32xf32, #tpu.memory_space<vmem>>, %arg8: memref<24x32xf32, #tpu.memory_space<vmem>>, %arg9: memref<1x32xf32, #tpu.memory_space<vmem>>, %arg10: memref<32x32xf32, #tpu.memory_space<vmem>>, %arg11: memref<1x32xf32, #tpu.memory_space<vmem>>, %arg12: memref<1x16x32xf32, #tpu.memory_space<vmem>>) attributes {dimension_semantics = [#tpu.dimension_semantics<parallel>, #tpu.dimension_semantics<parallel>], iteration_bounds = array<i64: 2, 1>, scalar_prefetch = 0 : i64, scratch_operands = 0 : i64, tpu.core_type = #tpu.core_type<tc>, window_params = [{transform_indices = @transform_0, window_bounds = array<i64: 1, 16, 32>}, {transform_indices = @transform_1, window_bounds = array<i64: 1, 8, 24>}, {pipeline_mode = #tpu.pipeline_mode<synchronous>, transform_indices = @transform_2, window_bounds = array<i64: 32, 32>}, {pipeline_mode = #tpu.pipeline_mode<synchronous>, transform_indices = @transform_3, window_bounds = array<i64: 1, 32>}, {pipeline_mode = #tpu.pipeline_mode<synchronous>, transform_indices = @transform_4, window_bounds = array<i64: 24, 32>}, {pipeline_mode = #tpu.pipeline_mode<synchronous>, transform_indices = @transform_5, window_bounds = array<i64: 1, 32>}, {pipeline_mode = #tpu.pipeline_mode<synchronous>, transform_indices = @transform_6, window_bounds = array<i64: 24, 32>}, {pipeline_mode = #tpu.pipeline_mode<synchronous>, transform_indices = @transform_7, window_bounds = array<i64: 1, 32>}, {pipeline_mode = #tpu.pipeline_mode<synchronous>, transform_indices = @transform_8, window_bounds = array<i64: 32, 32>}, {pipeline_mode = #tpu.pipeline_mode<synchronous>, transform_indices = @transform_9, window_bounds = array<i64: 1, 32>}, {transform_indices = @transform_10, window_bounds = array<i64: 1, 16, 32>}]} {
    %c0 = arith.constant 0 : index
    %c0_0 = arith.constant 0 : index
    %c0_1 = arith.constant 0 : index
    %0 = vector.load %arg2[%c0, %c0_0, %c0_1] : memref<1x16x32xf32, #tpu.memory_space<vmem>>, vector<1x16x32xf32>
    %1 = vector.shape_cast %0 : vector<1x16x32xf32> to vector<16x32xf32>
    %c0_2 = arith.constant 0 : index
    %c0_3 = arith.constant 0 : index
    %c0_4 = arith.constant 0 : index
    %2 = vector.load %arg3[%c0_2, %c0_3, %c0_4] : memref<1x8x24xf32, #tpu.memory_space<vmem>>, vector<1x8x24xf32>
    %3 = vector.shape_cast %2 : vector<1x8x24xf32> to vector<8x24xf32>
    %c0_5 = arith.constant 0 : index
    %c0_6 = arith.constant 0 : index
    %4 = vector.load %arg4[%c0_5, %c0_6] : memref<32x32xf32, #tpu.memory_space<vmem>>, vector<32x32xf32>
    %cst = arith.constant dense<0.000000e+00> : vector<16x32xf32>
    %5 = tpu.matmul %1, %4, %cst {dimension_numbers = #tpu.dot_dimension_numbers<[1], [0], [0], [1], [0, 0, 1, 1], [], []>} : vector<16x32xf32>, vector<32x32xf32>, vector<16x32xf32> -> vector<16x32xf32>
    %c0_7 = arith.constant 0 : index
    %c0_8 = arith.constant 0 : index
    %6 = vector.load %arg5[%c0_7, %c0_8] : memref<1x32xf32, #tpu.memory_space<vmem>>, vector<1x32xf32>
    %7 = vector.broadcast %6 : vector<1x32xf32> to vector<16x32xf32>
    %8 = arith.addf %5, %7 : vector<16x32xf32>
    %c0_9 = arith.constant 0 : index
    %c0_10 = arith.constant 0 : index
    %9 = vector.load %arg6[%c0_9, %c0_10] : memref<24x32xf32, #tpu.memory_space<vmem>>, vector<24x32xf32>
    %cst_11 = arith.constant dense<0.000000e+00> : vector<8x32xf32>
    %10 = tpu.matmul %3, %9, %cst_11 {dimension_numbers = #tpu.dot_dimension_numbers<[1], [0], [0], [1], [0, 0, 1, 1], [], []>} : vector<8x24xf32>, vector<24x32xf32>, vector<8x32xf32> -> vector<8x32xf32>
    %c0_12 = arith.constant 0 : index
    %c0_13 = arith.constant 0 : index
    %11 = vector.load %arg7[%c0_12, %c0_13] : memref<1x32xf32, #tpu.memory_space<vmem>>, vector<1x32xf32>
    %12 = vector.broadcast %11 : vector<1x32xf32> to vector<8x32xf32>
    %13 = arith.addf %10, %12 : vector<8x32xf32>
    %c0_14 = arith.constant 0 : index
    %c0_15 = arith.constant 0 : index
    %14 = vector.load %arg8[%c0_14, %c0_15] : memref<24x32xf32, #tpu.memory_space<vmem>>, vector<24x32xf32>
    %cst_16 = arith.constant dense<0.000000e+00> : vector<8x32xf32>
    %15 = tpu.matmul %3, %14, %cst_16 {dimension_numbers = #tpu.dot_dimension_numbers<[1], [0], [0], [1], [0, 0, 1, 1], [], []>} : vector<8x24xf32>, vector<24x32xf32>, vector<8x32xf32> -> vector<8x32xf32>
    %c0_17 = arith.constant 0 : index
    %c0_18 = arith.constant 0 : index
    %16 = vector.load %arg9[%c0_17, %c0_18] : memref<1x32xf32, #tpu.memory_space<vmem>>, vector<1x32xf32>
    %17 = vector.broadcast %16 : vector<1x32xf32> to vector<8x32xf32>
    %18 = arith.addf %15, %17 : vector<8x32xf32>
    %19 = vector.extract_strided_slice %8 {offsets = [0, 0], sizes = [16, 8], strides = [1, 1]} : vector<16x32xf32> to vector<16x8xf32>
    %20 = vector.extract_strided_slice %13 {offsets = [0, 0], sizes = [8, 8], strides = [1, 1]} : vector<8x32xf32> to vector<8x8xf32>
    %21 = vector.extract_strided_slice %18 {offsets = [0, 0], sizes = [8, 8], strides = [1, 1]} : vector<8x32xf32> to vector<8x8xf32>
    %cst_19 = arith.constant dense<0.000000e+00> : vector<16x8xf32>
    %22 = tpu.matmul %19, %20, %cst_19 {dimension_numbers = #tpu.dot_dimension_numbers<[1], [1], [0], [0], [0, 0, 1, 0], [], []>} : vector<16x8xf32>, vector<8x8xf32>, vector<16x8xf32> -> vector<16x8xf32>
    %cst_20 = arith.constant dense<0xFF800000> : vector<16xf32>
    %23 = vector.multi_reduction <maximumf>, %22, %cst_20 [1] : vector<16x8xf32> to vector<16xf32>
    %24 = vector.shape_cast %23 : vector<16xf32> to vector<16x1xf32>
    %25 = vector.broadcast %24 : vector<16x1xf32> to vector<16x8xf32>
    %26 = arith.subf %22, %25 : vector<16x8xf32>
    %27 = math.exp %26 : vector<16x8xf32>
    %cst_21 = arith.constant dense<0.000000e+00> : vector<16xf32>
    %28 = vector.multi_reduction <add>, %27, %cst_21 [1] : vector<16x8xf32> to vector<16xf32>
    %29 = vector.shape_cast %28 : vector<16xf32> to vector<16x1xf32>
    %cst_22 = arith.constant dense<0.000000e+00> : vector<16x8xf32>
    %30 = tpu.matmul %27, %21, %cst_22 {dimension_numbers = #tpu.dot_dimension_numbers<[1], [0], [0], [1], [0, 0, 1, 1], [], []>} : vector<16x8xf32>, vector<8x8xf32>, vector<16x8xf32> -> vector<16x8xf32>
    %31 = tpu.reciprocal %29 {approx = true} : vector<16x1xf32> -> vector<16x1xf32>
    %32 = vector.broadcast %31 : vector<16x1xf32> to vector<16x8xf32>
    %33 = arith.mulf %30, %32 : vector<16x8xf32>
    %34 = vector.extract_strided_slice %8 {offsets = [0, 8], sizes = [16, 8], strides = [1, 1]} : vector<16x32xf32> to vector<16x8xf32>
    %35 = vector.extract_strided_slice %13 {offsets = [0, 8], sizes = [8, 8], strides = [1, 1]} : vector<8x32xf32> to vector<8x8xf32>
    %36 = vector.extract_strided_slice %18 {offsets = [0, 8], sizes = [8, 8], strides = [1, 1]} : vector<8x32xf32> to vector<8x8xf32>
    %cst_23 = arith.constant dense<0.000000e+00> : vector<16x8xf32>
    %37 = tpu.matmul %34, %35, %cst_23 {dimension_numbers = #tpu.dot_dimension_numbers<[1], [1], [0], [0], [0, 0, 1, 0], [], []>} : vector<16x8xf32>, vector<8x8xf32>, vector<16x8xf32> -> vector<16x8xf32>
    %cst_24 = arith.constant dense<0xFF800000> : vector<16xf32>
    %38 = vector.multi_reduction <maximumf>, %37, %cst_24 [1] : vector<16x8xf32> to vector<16xf32>
    %39 = vector.shape_cast %38 : vector<16xf32> to vector<16x1xf32>
    %40 = vector.broadcast %39 : vector<16x1xf32> to vector<16x8xf32>
    %41 = arith.subf %37, %40 : vector<16x8xf32>
    %42 = math.exp %41 : vector<16x8xf32>
    %cst_25 = arith.constant dense<0.000000e+00> : vector<16xf32>
    %43 = vector.multi_reduction <add>, %42, %cst_25 [1] : vector<16x8xf32> to vector<16xf32>
    %44 = vector.shape_cast %43 : vector<16xf32> to vector<16x1xf32>
    %cst_26 = arith.constant dense<0.000000e+00> : vector<16x8xf32>
    %45 = tpu.matmul %42, %36, %cst_26 {dimension_numbers = #tpu.dot_dimension_numbers<[1], [0], [0], [1], [0, 0, 1, 1], [], []>} : vector<16x8xf32>, vector<8x8xf32>, vector<16x8xf32> -> vector<16x8xf32>
    %46 = tpu.reciprocal %44 {approx = true} : vector<16x1xf32> -> vector<16x1xf32>
    %47 = vector.broadcast %46 : vector<16x1xf32> to vector<16x8xf32>
    %48 = arith.mulf %45, %47 : vector<16x8xf32>
    %49 = vector.extract_strided_slice %8 {offsets = [0, 16], sizes = [16, 8], strides = [1, 1]} : vector<16x32xf32> to vector<16x8xf32>
    %50 = vector.extract_strided_slice %13 {offsets = [0, 16], sizes = [8, 8], strides = [1, 1]} : vector<8x32xf32> to vector<8x8xf32>
    %51 = vector.extract_strided_slice %18 {offsets = [0, 16], sizes = [8, 8], strides = [1, 1]} : vector<8x32xf32> to vector<8x8xf32>
    %cst_27 = arith.constant dense<0.000000e+00> : vector<16x8xf32>
    %52 = tpu.matmul %49, %50, %cst_27 {dimension_numbers = #tpu.dot_dimension_numbers<[1], [1], [0], [0], [0, 0, 1, 0], [], []>} : vector<16x8xf32>, vector<8x8xf32>, vector<16x8xf32> -> vector<16x8xf32>
    %cst_28 = arith.constant dense<0xFF800000> : vector<16xf32>
    %53 = vector.multi_reduction <maximumf>, %52, %cst_28 [1] : vector<16x8xf32> to vector<16xf32>
    %54 = vector.shape_cast %53 : vector<16xf32> to vector<16x1xf32>
    %55 = vector.broadcast %54 : vector<16x1xf32> to vector<16x8xf32>
    %56 = arith.subf %52, %55 : vector<16x8xf32>
    %57 = math.exp %56 : vector<16x8xf32>
    %cst_29 = arith.constant dense<0.000000e+00> : vector<16xf32>
    %58 = vector.multi_reduction <add>, %57, %cst_29 [1] : vector<16x8xf32> to vector<16xf32>
    %59 = vector.shape_cast %58 : vector<16xf32> to vector<16x1xf32>
    %cst_30 = arith.constant dense<0.000000e+00> : vector<16x8xf32>
    %60 = tpu.matmul %57, %51, %cst_30 {dimension_numbers = #tpu.dot_dimension_numbers<[1], [0], [0], [1], [0, 0, 1, 1], [], []>} : vector<16x8xf32>, vector<8x8xf32>, vector<16x8xf32> -> vector<16x8xf32>
    %61 = tpu.reciprocal %59 {approx = true} : vector<16x1xf32> -> vector<16x1xf32>
    %62 = vector.broadcast %61 : vector<16x1xf32> to vector<16x8xf32>
    %63 = arith.mulf %60, %62 : vector<16x8xf32>
    %64 = vector.extract_strided_slice %8 {offsets = [0, 24], sizes = [16, 8], strides = [1, 1]} : vector<16x32xf32> to vector<16x8xf32>
    %65 = vector.extract_strided_slice %13 {offsets = [0, 24], sizes = [8, 8], strides = [1, 1]} : vector<8x32xf32> to vector<8x8xf32>
    %66 = vector.extract_strided_slice %18 {offsets = [0, 24], sizes = [8, 8], strides = [1, 1]} : vector<8x32xf32> to vector<8x8xf32>
    %cst_31 = arith.constant dense<0.000000e+00> : vector<16x8xf32>
    %67 = tpu.matmul %64, %65, %cst_31 {dimension_numbers = #tpu.dot_dimension_numbers<[1], [1], [0], [0], [0, 0, 1, 0], [], []>} : vector<16x8xf32>, vector<8x8xf32>, vector<16x8xf32> -> vector<16x8xf32>
    %cst_32 = arith.constant dense<0xFF800000> : vector<16xf32>
    %68 = vector.multi_reduction <maximumf>, %67, %cst_32 [1] : vector<16x8xf32> to vector<16xf32>
    %69 = vector.shape_cast %68 : vector<16xf32> to vector<16x1xf32>
    %70 = vector.broadcast %69 : vector<16x1xf32> to vector<16x8xf32>
    %71 = arith.subf %67, %70 : vector<16x8xf32>
    %72 = math.exp %71 : vector<16x8xf32>
    %cst_33 = arith.constant dense<0.000000e+00> : vector<16xf32>
    %73 = vector.multi_reduction <add>, %72, %cst_33 [1] : vector<16x8xf32> to vector<16xf32>
    %74 = vector.shape_cast %73 : vector<16xf32> to vector<16x1xf32>
    %cst_34 = arith.constant dense<0.000000e+00> : vector<16x8xf32>
    %75 = tpu.matmul %72, %66, %cst_34 {dimension_numbers = #tpu.dot_dimension_numbers<[1], [0], [0], [1], [0, 0, 1, 1], [], []>} : vector<16x8xf32>, vector<8x8xf32>, vector<16x8xf32> -> vector<16x8xf32>
    %76 = tpu.reciprocal %74 {approx = true} : vector<16x1xf32> -> vector<16x1xf32>
    %77 = vector.broadcast %76 : vector<16x1xf32> to vector<16x8xf32>
    %78 = arith.mulf %75, %77 : vector<16x8xf32>
    %79 = tpu.concatenate %33, %48, %63, %78 in 1 : vector<16x8xf32>, vector<16x8xf32>, vector<16x8xf32>, vector<16x8xf32> -> vector<16x32xf32>
    %c0_35 = arith.constant 0 : index
    %c0_36 = arith.constant 0 : index
    %80 = vector.load %arg10[%c0_35, %c0_36] : memref<32x32xf32, #tpu.memory_space<vmem>>, vector<32x32xf32>
    %cst_37 = arith.constant dense<0.000000e+00> : vector<16x32xf32>
    %81 = tpu.matmul %79, %80, %cst_37 {dimension_numbers = #tpu.dot_dimension_numbers<[1], [0], [0], [1], [0, 0, 1, 1], [], []>} : vector<16x32xf32>, vector<32x32xf32>, vector<16x32xf32> -> vector<16x32xf32>
    %c0_38 = arith.constant 0 : index
    %c0_39 = arith.constant 0 : index
    %82 = vector.load %arg11[%c0_38, %c0_39] : memref<1x32xf32, #tpu.memory_space<vmem>>, vector<1x32xf32>
    %83 = vector.broadcast %82 : vector<1x32xf32> to vector<16x32xf32>
    %84 = arith.addf %81, %83 : vector<16x32xf32>
    %c0_40 = arith.constant 0 : index
    %c0_41 = arith.constant 0 : index
    %c0_42 = arith.constant 0 : index
    %85 = vector.load %arg12[%c0_40, %c0_41, %c0_42] : memref<1x16x32xf32, #tpu.memory_space<vmem>>, vector<1x16x32xf32>
    %86 = vector.shape_cast %85 : vector<1x16x32xf32> to vector<16x32xf32>
    %87 = vector.shape_cast %84 : vector<16x32xf32> to vector<1x16x32xf32>
    tpu.vector_store %arg12[%c0_40, %c0_41, %c0_42], %87 {strides = array<i32>} : memref<1x16x32xf32, #tpu.memory_space<vmem>>, vector<1x16x32xf32>,
    return
  }
  func.func @transform_0(%arg0: i32, %arg1: i32) -> (i32, i32, i32) {
    %c0_i32 = arith.constant 0 : i32
    %c0_i32_0 = arith.constant 0 : i32
    return %arg0, %arg1, %c0_i32 : i32, i32, i32
  }
  func.func @transform_1(%arg0: i32, %arg1: i32) -> (i32, i32, i32) {
    %c0_i32 = arith.constant 0 : i32
    %c0_i32_0 = arith.constant 0 : i32
    %c0_i32_1 = arith.constant 0 : i32
    return %arg0, %c0_i32, %c0_i32_0 : i32, i32, i32
  }
  func.func @transform_2(%arg0: i32, %arg1: i32) -> (i32, i32) {
    %c0_i32 = arith.constant 0 : i32
    %c0_i32_0 = arith.constant 0 : i32
    %c0_i32_1 = arith.constant 0 : i32
    return %c0_i32, %c0_i32_0 : i32, i32
  }
  func.func @transform_3(%arg0: i32, %arg1: i32) -> (i32, i32) {
    %c0_i32 = arith.constant 0 : i32
    %c0_i32_0 = arith.constant 0 : i32
    %c0_i32_1 = arith.constant 0 : i32
    return %c0_i32, %c0_i32_0 : i32, i32
  }
  func.func @transform_4(%arg0: i32, %arg1: i32) -> (i32, i32) {
    %c0_i32 = arith.constant 0 : i32
    %c0_i32_0 = arith.constant 0 : i32
    %c0_i32_1 = arith.constant 0 : i32
    return %c0_i32, %c0_i32_0 : i32, i32
  }
  func.func @transform_5(%arg0: i32, %arg1: i32) -> (i32, i32) {
    %c0_i32 = arith.constant 0 : i32
    %c0_i32_0 = arith.constant 0 : i32
    %c0_i32_1 = arith.constant 0 : i32
    return %c0_i32, %c0_i32_0 : i32, i32
  }
  func.func @transform_6(%arg0: i32, %arg1: i32) -> (i32, i32) {
    %c0_i32 = arith.constant 0 : i32
    %c0_i32_0 = arith.constant 0 : i32
    %c0_i32_1 = arith.constant 0 : i32
    return %c0_i32, %c0_i32_0 : i32, i32
  }
  func.func @transform_7(%arg0: i32, %arg1: i32) -> (i32, i32) {
    %c0_i32 = arith.constant 0 : i32
    %c0_i32_0 = arith.constant 0 : i32
    %c0_i32_1 = arith.constant 0 : i32
    return %c0_i32, %c0_i32_0 : i32, i32
  }
  func.func @transform_8(%arg0: i32, %arg1: i32) -> (i32, i32) {
    %c0_i32 = arith.constant 0 : i32
    %c0_i32_0 = arith.constant 0 : i32
    %c0_i32_1 = arith.constant 0 : i32
    return %c0_i32, %c0_i32_0 : i32, i32
  }
  func.func @transform_9(%arg0: i32, %arg1: i32) -> (i32, i32) {
    %c0_i32 = arith.constant 0 : i32
    %c0_i32_0 = arith.constant 0 : i32
    %c0_i32_1 = arith.constant 0 : i32
    return %c0_i32, %c0_i32_0 : i32, i32
  }
  func.func @transform_10(%arg0: i32, %arg1: i32) -> (i32, i32, i32) {
    %c0_i32 = arith.constant 0 : i32
    %c0_i32_0 = arith.constant 0 : i32
    return %arg0, %arg1, %c0_i32 : i32, i32, i32
  }
}

</mosaic_0001>

<bundles_post_ra>
// kernel: tpu_custom_call.1
= control target key start
LH: loop header
LB: loop body
LE: loop exit
PB: predicated region body
PF: predicated region fallthrough
CT: control target
= control target key end

     0   :  { %s2046_s0 = inlined_call_operand.hbm [shape: f32[2,16,32], index: 0, kind: input, shape index: {}]   ;;  %s2047_s1 = inlined_call_operand.hbm [shape: f32[2,8,24], index: 1, kind: input, shape index: {}]   ;;  %s2048_s2 = inlined_call_operand.hbm [shape: f32[32,32], index: 2, kind: input, shape index: {}]   ;;  %s2049_s3 = inlined_call_operand.vmem [shape: f32[1,32], index: 3, kind: input, shape index: {}]   ;;  %s2050_s4 = inlined_call_operand.hbm [shape: f32[24,32], index: 4, kind: input, shape index: {}]   ;;  %s2051_s5 = inlined_call_operand.vmem [shape: f32[1,32], index: 5, kind: input, shape index: {}]   ;;  %s2052_s6 = inlined_call_operand.hbm [shape: f32[24,32], index: 6, kind: input, shape index: {}]   ;;  %s2053_s7 = inlined_call_operand.vmem [shape: f32[1,32], index: 7, kind: input, shape index: {}]   ;;  %s2054_s8 = inlined_call_operand.hbm [shape: f32[32,32], index: 8, kind: input, shape index: {}]   ;;  %s2055_s9 = inlined_call_operand.vmem [shape: f32[1,32], index: 9, kind: input, shape index: {}]   ;;  %s2056_s10 = inlined_call_operand.hbm [shape: f32[2,16,32], index: 10, kind: output, shape index: {}]  }
   0x1   :  { %2066 = sst [smem:[#allocation26_spill]] %s2048_s2 }
   0x2   :  { %2067 = sst [smem:[#allocation27_spill]] %s2050_s4 }
   0x3   :  { %2068 = sst [smem:[#allocation28_spill]] %s2052_s6 }
   0x4   :  { %2069 = sst [smem:[#allocation29_spill]] %s2054_s8 }
   0x5   :  { %2070 = sst [smem:[#allocation30_spill]] %s2056_s10 }
   0x6   :  { %15 = vsyncpa [#allocation3], 0 }
   0x7   :  { %17 = vsyncpa [#allocation3 + $0x1], 0 }
   0x8   :  { %18 = vsyncpa [#allocation6], 0 }
   0x9   :  { %20 = vsyncpa [#allocation6 + $0x1], 0 }
   0xa   :  { %21 = vsyncpa [#allocation9], 0 }
   0xb   :  { %22 = vsyncpa [#allocation12], 0 }
   0xc   :  { %23 = vsyncpa [#allocation4], 0 }
   0xd   :  { %25 = vsyncpa [#allocation4 + $0x1], 0  ;;  %s1748_s13 = smov 0   ;;  %s1750_s14 = smov 0  }
   0xe   :  { %s1752_s15 = smov 0   ;;  %s1754_s16 = smov 0  }
   0xf   :  { %s1756_s17 = smov 0   ;;  %s1758_s18 = smov 0  }
  0x10 LB: > { %2071 = sst [smem:[#allocation20_spill]] %s1658_s13  ;;  %s1779_s19 = sadd.s32 4294967295, %s1678_s18   ;;  %s1678_s18 = sphi %s1758_s18, %s31_s18   ;;  %s1674_s17 = sphi %s1756_s17, %s2100_s17   ;;  %s1670_s16 = sphi %s1754_s16, %s2099_s16   ;;  %s1666_s15 = sphi %s1752_s15, %s2098_s15   ;;  %s1662_s14 = sphi %s1750_s14, %s2097_s14   ;;  %s1658_s13 = sphi %s1748_s13, %s2096_s13  }
  0x11   : > { %2072 = sst [smem:[#allocation21_spill]] %s1666_s15  ;;  %s1193_s20 = sadd.s32 4294967294, %s1678_s18  }
  0x12   : > { %p65_p0 = scmp.ne.s32.totalorder %s1662_s14, %s1658_s13  ;;  %p66_p1 = scmp.eq.s32.totalorder %s1779_s19, 0 }
  0x13   : > { %p285_p2 = scmp.eq.s32.totalorder %s1779_s19, 1  ;;  %p291_p3 = scmp.eq.s32.totalorder %s1193_s20, 1 }
  0x14   : > { %p1788_p4 = por %p66_p1, %p65_p0  ;;  %p1194_p5 = scmp.ge.s32.totalorder %s1678_s18, 1 }
  0x15   : > { %p1793_p6 = por %p291_p3, %p65_p0  ;;  %p298_p7 = scmp.lt.s32.totalorder %s1678_s18, 3 }
  0x16   : > { %s2076_s2 = sld [smem:[#allocation26_spill]]  ;;  %s1680_s27 = smov [#allocation7]  }
  0x17   : > { %s2074_s22 = scalar_select %p1793_p6, 1, 0 }
  0x18   : > { %p1801_p8 = pnand %p1194_p5, %p298_p7  ;;  %s311_s28 = sshll.u32 %s1680_s27, 4  ;;  %s312_s28 = int_to_ptr.vmem [resolvable:$true] %s311_s28 }
  0x19   : > { %2075 = sst [smem:[#allocation22_spill]] %s2074_s22  ;;  %p1199_p11 = scmp.ge.s32.totalorder %s1678_s18, 2 }
  0x1a   : > { %p1269_p9 = pneg %p1801_p8  ;;  %s2079_s4 = sld [smem:[#allocation27_spill]] }
  0x1b   : > { %s2059_s20 = smov 128   ;;  %s2060_s23 = smov 8  }
  0x1c   : > { %s309_s25 = sshll.u32 %s2076_s2, 4  ;;  %p1809_p10 = pnand %p1269_p9, %p66_p1  ;;  %s310_s25 = int_to_ptr.hbm [resolvable:$true] %s309_s25 }
  0x1d   : > { %s1683_s24 = smov [#allocation8]   ;;  %s2080_s6 = sld [smem:[#allocation28_spill]] }
  0x1e   : > { %1272 = dma.hbm_to_vmem [thread:$0]  (!%p1809_p10), %s310_s25, 512, %s312_s28, [#allocation6], %s2059_s20, %s2059_s20, %s2060_s23  }
  0x1f   : > { %s328_s27 = sshll.u32 %s1683_s24, 4  ;;  %s2081_s8 = sld [smem:[#allocation29_spill]]  ;;  %s329_s27 = int_to_ptr.vmem [resolvable:$true] %s328_s27 }
  0x20   : > { %s326_s12 = sshll.u32 %s2079_s4, 4  ;;  %s1684_s11 = smov [#allocation10]   ;;  %s327_s12 = int_to_ptr.hbm [resolvable:$true] %s326_s12 }
  0x21   : > { %1275 = dma.hbm_to_vmem [thread:$0]  (!%p1809_p10), %s327_s12, 384, %s329_s27, [#allocation9], %s2059_s20, %s2059_s20, %s2060_s23  }
  0x22   : > { %s345_s24 = sshll.u32 %s1684_s11, 4  ;;  %s1685_s2 = smov [#allocation11]   ;;  %s346_s24 = int_to_ptr.vmem [resolvable:$true] %s345_s24 }
  0x23   : > { %s343_s13 = sshll.u32 %s2080_s6, 4  ;;  %s362_s22 = sshll.u32 %s1685_s2, 4  ;;  %s344_s13 = int_to_ptr.hbm [resolvable:$true] %s343_s13  ;;  %s363_s22 = int_to_ptr.vmem [resolvable:$true] %s362_s22 }
  0x24   : > { %1278 = dma.hbm_to_vmem [thread:$0]  (!%p1809_p10), %s344_s13, 384, %s346_s24, [#allocation9], %s2059_s20, %s2059_s20, %s2060_s23  }
  0x25   : > { %s360_s30 = sshll.u32 %s2081_s8, 4  ;;  %s43_s12 = sadd.s32 1, %s1674_s17  ;;  %s361_s30 = int_to_ptr.hbm [resolvable:$true] %s360_s30 }
  0x26   : > { %1281 = dma.hbm_to_vmem [thread:$0]  (!%p1809_p10), %s361_s30, 512, %s363_s22, [#allocation12], %s2059_s20, %s2059_s20, %s2060_s23  }
  0x27   : > { %s52_s27 = sadd.s32 1, %s1666_s15  ;;  %p45_p12 = scmp.ge.s32.totalorder %s43_s12, 2 }
  0x28   : > { %p59_p13 = scmp.ne.s32.totalorder %s1666_s15, %s1662_s14  ;;  %p60_p0 = scmp.eq.s32.totalorder %s1678_s18, 0 }
  0x29   : > { %p1297_p3 = scmp.lt.s32.totalorder %s1678_s18, 2  ;;  %s2102_s12 = smov (%p45_p12, %s43_s12), 0 }
  0x2a   : > { %2082 = sst [smem:[#allocation23_spill]] %s2102_s12  ;;  %p1851_p5 = por %p60_p0, %p59_p13 }
  0x2b   : > { %p1857_p7 = por %p285_p2, %p59_p13  ;;  %s47_s25 = ssub.s32 %s1674_s17, %s2102_s12 }
  0x2c   : > { %s379_s28 = sand.u32 1, %s1666_s15   ;;  %p50_p9 = scmp.eq.s32.totalorder %s47_s25, 0 }
  0x2d   : > { %s2084_s29 = scalar_select %p1857_p7, 1, 0 }
  0x2e   : > { %s1200_s30 = sshll.u32 %s379_s28, 4  ;;  %s1244_s11 = sshll.u32 %s1674_s17, 4 }
  0x2f   : > { %2085 = sst [smem:[#allocation24_spill]] %s2084_s29  ;;  %s390_s20 = scalar_lea.hbm %s2046_s0, %s1244_s11 }
  0x30   : > { %s1866_s24 = scalar_select %p50_p9, %s1666_s15, %s52_s27  }
  0x31   : > { %s391_s23 = sshll.u32 %s390_s20, 4  ;;  %s383_s4 = scalar_lea.vmem [#allocation2], %s1200_s30  ;;  %s392_s23 = int_to_ptr.hbm [resolvable:$true] %s391_s23 }
  0x32   : > { %2086 = sst [smem:[#allocation25_spill]] %s1866_s24  ;;  %s393_s6 = sshll.u32 %s383_s4, 4  ;;  %s394_s6 = int_to_ptr.vmem [resolvable:$true] %s393_s6 }
  0x33   : > { %p1283_p2 = pnand %p1297_p3, %p1851_p5  ;;  %s403_s8 = sand.u32 1, %s1678_s18  }
  0x34   : > { %s1203_s12 = sshll.u32 %s379_s28, 3  ;;  %s380_s10 = scalar_lea.sflag [#allocation3], %s379_s28 }
  0x35   : > { %s2087_s25 = smov 8   ;;  %s2088_s29 = smov 128  }
  0x36   : > { %1285 = dma.hbm_to_vmem [thread:$0]  (!%p1283_p2), %s392_s23, 256, %s394_s6, %s380_s10, %s2088_s29, %s2088_s29, %s2087_s25  }
  0x37   : > { %s1204_s27 = sshll.u32 %s1674_s17, 3  ;;  %s407_s24 = scalar_lea.vmem [#allocation5], %s1203_s12 }
  0x38   : > { %s415_s15 = sshll.u32 %s407_s24, 4  ;;  %s411_s20 = scalar_lea.hbm %s2047_s1, %s1204_s27  ;;  %s416_s15 = int_to_ptr.vmem [resolvable:$true] %s415_s15 }
  0x39   : > { %s413_s4 = sshll.u32 %s411_s20, 4  ;;  %s404_s13 = scalar_lea.sflag [#allocation6], %s403_s8  ;;  %s414_s4 = int_to_ptr.hbm [resolvable:$true] %s413_s4 }
  0x3a   : > { %1288 = dma.hbm_to_vmem [thread:$0]  (!%p1283_p2), %s414_s4, 128, %s416_s15, %s404_s13  }
  0x3b   : > { %424 = sbr.rel (%p1801_p8) target bundleno = 1143 (0x477), region = 60  ;;  %s1886_s28 = sand.u32 (!%p1801_p8), 1, %s1662_s14  }
  0x3c   : > { %s1206_s6 = sshll.u32 (!%p1801_p8), %s1886_s28, 4  ;;  %s427_s10 = scalar_lea.sflag (!%p1801_p8), [#allocation3], %s1886_s28 }
  0x3d   : > { %s1892_s23 = scalar_lea.vmem (!%p1801_p8), [#allocation2], %s1206_s6 }
  0x40   : > { %1633 = dma.done.wait (%p1788_p4), %s427_s10, 256  }
  0x41   : > { %1635 = vsyncadd (%p1788_p4), %s427_s10, 4294967040  ;;  %s436_s8 = sand.u32 1, %s1779_s19   ;;  %s1207_s15 = sshll.u32 %s1886_s28, 3 }
  0x42   : > { %s437_s26 = scalar_lea.sflag [#allocation6], %s436_s8  ;;  %s440_s12 = scalar_lea.vmem [#allocation5], %s1207_s15 }
  0x43   : > { %1637 = dma.done.wait (%p1788_p4), %s437_s26, 128  }
  0x44   : > { %1639 = vsyncadd (%p1788_p4), %s437_s26, 4294967168 }
  0x45   : > { %1641 = dma.done.wait (%p66_p1), [#allocation6], 512  }
  0x46   : > { %1643 = vsyncadd (%p66_p1), [#allocation6], 4294966784 }
  0x47   : > { %1645 = dma.done.wait (%p66_p1), [#allocation9], 768  }
  0x48   : > { %1647 = vsyncadd (%p66_p1), [#allocation9], 4294966528 }
  0x49   : > { %1649 = dma.done.wait (%p66_p1), [#allocation12], 512  }
  0x4a   : > { %1651 = vsyncadd (%p66_p1), [#allocation12], 4294966784  ;;  %v548_v0 = vld [vmem:[#allocation8 + $0x10] sm:$0xff]  ;;  %v511_v1 = vld [vmem:[#allocation7 + $0x18] sm:$0xff]  ;;  %vm553_vm0 = vcmask 195584   ;;  %vm516_vm1 = vcmask 261120  }
  0x4b   : > { %v547_v2 = vld [vmem:[#allocation8 + $0x8] sm:$0xff]  ;;  %570 = vmatpush.msra.mxu1 %v548_v0  ;;  %535 = vmatpush.msra.mxu0 %v511_v1  ;;  %v510_v3 = vld [vmem:[#allocation7 + $0x10] sm:$0xff]  ;;  %v546_v4 = vld [vmem:[#allocation8] sm:$0xff]  ;;  %vm604_vm2 = vcmask 64512   ;;  %s1686_s24 = smov 104   ;;  %s1687_s22 = smov 120  }
  0x4c   : > { %v509_v5 = vld [vmem:[#allocation7 + $0x8] sm:$0xff]  ;;  %v507_v6 = vld [vmem:[%s440_s12] sm:$0xff]  ;;  %v508_v7 = vld [vmem:[#allocation7] sm:$0xff]  ;;  %s1688_s25 = smov 112   ;;  %s1689_s11 = smov 8   ;;  %vm982_vm3 = vcmask 130048  }
  0x4d   : > { %571 = vmatpush.msra.mxu1 %v547_v2  ;;  %536 = vmatpush.msra.mxu0 %v510_v3  ;;  %v505_v8 = vld [vmem:[%s1892_s23] sm:$0xff]  ;;  %v506_v9 = vld [vmem:[%s1892_s23 + $0x8] sm:$0xff]  ;;  %s1690_s20 = smov 16   ;;  %s1691_s4 = smov 24  }
  0x4e   : > { %v579_v10 = vld [vmem:[#allocation10 + $0x10] sm:$0xff]  ;;  %v578_v11 = vld [vmem:[#allocation10 + $0x8] sm:$0xff]  ;;  %v577_v12 = vld [vmem:[#allocation10] sm:$0xff]  ;;  %s1245_s23 = sshll.u32 %s1670_s16, 4  ;;  %s502_s15 = scalar_lea.vmem [#allocation13], %s1206_s6 }
  0x4f   : > { %572 = vmatpush.msra.mxu1 %v546_v4  ;;  %537 = vmatpush.msra.mxu0 %v509_v5  ;;  %v1364_v13 = vld [vmem:[%s2051_s5] ss:$0 sm:$0xff]  ;;  %s2090_s19 = sld [smem:[#allocation30_spill]]  ;;  %s1041_s29 = sshll.u32 %s502_s15, 4  ;;  %s1042_s29 = int_to_ptr.vmem [resolvable:$true] %s1041_s29 }
  0x50   : > { %1215 = vmatmul.msk.f32.vlgmr.msra.gmra.mxu1 %vm553_vm0, %v507_v6  ;;  %597 = vmatpush.msra.mxu2 %v579_v10  ;;  %v1365_v14 = vld [vmem:[%s2049_s3] ss:$0 sm:$0xff] }
  0x51   : > { %538 = vmatpush.msra.mxu0 %v508_v7  ;;  %v1366_v21 = vld [vmem:[%s2053_s7] ss:$0 sm:$0xff] }
  0x52   : > { %1213 = vmatmul.msk.f32.vlgmr.msra.gmra.mxu0 %vm516_vm1, %v505_v8  ;;  %598 = vmatpush.msra.mxu2 %v578_v11 }
  0x54   : > { %599 = vmatpush.msra.mxu2 %v577_v12 }
  0x55   : > { %1216 = vmatmul.msk.f32.vlgmr.msra.gmra.mxu2 %vm553_vm0, %v507_v6  ;;  %s1040_s21 = scalar_lea.hbm %s2090_s19, %s1245_s23  ;;  %s1600_s27 = scalar_lea.hbm %s2090_s19, 32 }
  0x56   : > { %s1043_s30 = sshll.u32 %s1040_s21, 4  ;;  %s1044_s30 = int_to_ptr.hbm [resolvable:$true] %s1043_s30 }
  0x57   : > { %s1594_s16 = sshra.s32 %s1044_s30, 4  ;;  %s1595_s16 = int_to_ptr.hbm [resolvable:$true] %s1594_s16 }
  0x58   : > { %p1601_p10 = scmp.lt.s32.totalorder %s1595_s16, %s2090_s19 }
  0x5a   : > { %1214 = vmatmul.msk.f32.gmra.mxu0 %vm516_vm1, %v506_v9 }
  0xcd   : > { %v574_v15 = vpop.f32.mrf.mxu1 }
  0xce   : > { %v575_v16 = vadd.f32 %v1364_v13, %v574_v15 }
  0xcf   : > { %v540_v17 = vpop.f32.mrf.mxu0 }
  0xd0   : > { %871 = vrot.lane.b32.xlu2 %v575_v16, %s1686_s24  ;;  %692 = vrot.lane.b32.xlu0 %v575_v16, %s1687_s22  ;;  %v541_v18 = vadd.f32 %v1365_v14, %v540_v17 }
  0xd1   : > { %1217 = vmatpush.xpose.msk.msra.mxu3 %vm604_vm2, %v575_v16 }
  0xd4   : > { %1218 = vmatmul.msk.f32.vlgmr.msra.gmra.mxu3 %vm604_vm2, %v541_v18 }
  0xd7   : > { %v543_v19 = vpop.f32.mrf.mxu0 }
  0xd8   : > { %v544_v20 = vadd.f32 %v1365_v14, %v543_v19  ;;  %688 = vrot.lane.b32.xlu0 %v541_v18, %s1687_s22  ;;  %v601_v22 = vpop.f32.mrf.mxu2 }
  0xd9   : > { %v1942_v23 = vadd.f32 %v1366_v21, %v601_v22 }
  0xda   : > { %690 = vrot.lane.b32.xlu1 %v544_v20, %s1687_s22 }
  0xdb   : > { %676 = vmatpush.msrb.mxu1 %v1942_v23 }
  0xdc   : > { %1219 = vmatmul.msk.f32.gmra.mxu3 %vm604_vm2, %v544_v20 }
  0xe0   : > { %867 = vrot.lane.b32.xlu0 %v541_v18, %s1686_s24 }
  0xe8   : > { %782 = vrot.lane.b32.xlu0 %v575_v16, %s1688_s25 }
  0xf0   : > { %869 = vrot.lane.b32.xlu0 %v544_v20, %s1686_s24 }
  0xf8   : > { %780 = vrot.lane.b32.xlu0 %v544_v20, %s1688_s25 }
 0x12a   : > { %v872_v25 = vpop.permute.xlu2 %871 }
 0x142   : > { %v693_v24 = vpop.permute.xlu0 %692 }
 0x143   : > { %1222 = vmatpush.xpose.msk.msrb.mxu2 %vm604_vm2, %v693_v24 }
 0x147   : > { %1232 = vmatpush.xpose.msk.msra.mxu2 %vm604_vm2, %v872_v25 }
 0x14a   : > { %v689_v26 = vpop.permute.xlu0 %688 }
 0x14b   : > { %1223 = vmatmul.msk.f32.vlgmr.msrb.gmra.mxu2 %vm604_vm2, %v689_v26 }
 0x14c   : > { %v691_v27 = vpop.permute.xlu1 %690 }
 0x152   : > { %v868_v28 = vpop.permute.xlu0 %867 }
 0x153   : > { %1224 = vmatmul.msk.f32.gmra.mxu2 %vm604_vm2, %v691_v27 }
 0x157   : > { %v631_v29 = vpop.f32.mrf.mxu3 }
 0x158   : > { %v637_v30 = vsel %vm604_vm2, %v631_v29, -inf }
 0x159   : > { %638 = vmax.xlane.f32.xlu1 %v637_v30 }
 0x15a   : > { %v783_v31 = vpop.permute.xlu0 %782 }
 0x15b   : > { %1227 = vmatpush.xpose.msk.msrb.mxu0 %vm604_vm2, %v783_v31  ;;  %1246 = vmatpush.xpose.msk.msra.mxu1 %vm604_vm2, %v783_v31 }
 0x15c   : > { %1233 = vmatmul.msk.f32.vlgmr.msra.gmra.mxu2 %vm604_vm2, %v868_v28 }
 0x15f   : > { %v634_v32 = vpop.f32.mrf.mxu3 }
 0x160   : > { %v640_v33 = vsel %vm604_vm2, %v634_v32, -inf }
 0x161   : > { %641 = vmax.xlane.f32.xlu2 %v640_v33 }
 0x162   : > { %v870_v34 = vpop.permute.xlu0 %869 }
 0x164   : > { %1234 = vmatmul.msk.f32.gmra.mxu2 %vm604_vm2, %v870_v34 }
 0x16a   : > { %v781_v50 = vpop.permute.xlu0 %780 }
 0x172   : > { %778 = vrot.lane.b32.xlu1 %v541_v18, %s1688_s25 }
 0x179   : > { %742 = vrot.lane.b32.xlu2 %v1942_v23, %s1687_s22  ;;  %s1596_s22 = scalar_lea.hbm %s1595_s16, 16 }
 0x17a   : > { %p1597_p1 = scmp.ne.s32.totalorder %s1595_s16, %s1596_s22  ;;  %p1602_p12 = scmp.lt.s32.totalorder %s1600_s27, %s1596_s22 }
 0x17c   : > { %p1598_p4 = pnand %p1597_p1, %p1857_p7  ;;  %p1603_p13 = por %p1602_p12, %p1601_p10 }
 0x17e   : > { %p1599_p8 = pneg %p1598_p4 }
 0x180   : > { %p1604_p0 = pnand %p1603_p13, %p1599_p8 }
 0x1cc   : > { %v639_v35 = vpop.xlane.xlu1 %638 }
 0x1cd   : > { %v643_v36 = vsub.f32 %v631_v29, %v639_v35 }
 0x1ce   : > { %v717_v37 = vpop.f32.mrf.mxu2 }
 0x1cf   : > { %v645_v38 = vmul.f32 1.442695, %v643_v36  ;;  %v723_v39 = vsel %vm604_vm2, %v717_v37, -inf }
 0x1d0   : > { %724 = vmax.xlane.f32.xlu1 %v723_v39 }
 0x1d1   : > { %1368 = vpow2.f32 %v645_v38 }
 0x1d4   : > { %v642_v40 = vpop.xlane.xlu2 %641 }
 0x1d5   : > { %v644_v41 = vsub.f32 %v634_v32, %v642_v40 }
 0x1d6   : > { %v720_v42 = vpop.f32.mrf.mxu2 }
 0x1d7   : > { %v1369_v43 = vpop.eup %1368  ;;  %v647_v44 = vmul.f32 1.442695, %v644_v41  ;;  %v726_v45 = vsel %vm604_vm2, %v720_v42, -inf }
 0x1d8   : > { %1220 = vmatmul.msk.f32.vlgmr.msrb.gmra.mxu1 %vm604_vm2, %v1369_v43  ;;  %727 = vmax.xlane.f32.xlu0 %v726_v45  ;;  %v649_v15 = vsel %vm604_vm2, %v1369_v43, 0.0 }
 0x1d9   : > { %1370 = vpow2.f32 %v647_v44 }
 0x1dc   : > { %v743_v53 = vpop.permute.xlu2 %742 }
 0x1dd   : > { %766 = vmatpush.msrb.mxu3 %v743_v53 }
 0x1df   : > { %v1371_v46 = vpop.eup %1370  ;;  %v896_v47 = vpop.f32.mrf.mxu2 }
 0x1e0   : > { %1221 = vmatmul.msk.f32.gmra.mxu1 %vm604_vm2, %v1371_v46  ;;  %v902_v48 = vsel %vm604_vm2, %v896_v47, -inf  ;;  %v652_v16 = vsel %vm604_vm2, %v1371_v46, 0.0 }
 0x1e1   : > { %903 = vmax.xlane.f32.xlu2 %v902_v48 }
 0x1e4   : > { %v779_v49 = vpop.permute.xlu1 %778 }
 0x1e5   : > { %1228 = vmatmul.msk.f32.vlgmr.msrb.gmra.mxu0 %vm604_vm2, %v779_v49 }
 0x1e7   : > { %v899_v51 = vpop.f32.mrf.mxu2 }
 0x1e8   : > { %1229 = vmatmul.msk.f32.vlgmr.msra.gmra.mxu1 %vm604_vm2, %v781_v50  ;;  %v905_v52 = vsel %vm604_vm2, %v899_v51, -inf }
 0x1e9   : > { %906 = vmax.xlane.f32.xlu0 %v905_v52 }
 0x243   : > { %v725_v54 = vpop.xlane.xlu1 %724 }
 0x244   : > { %v729_v55 = vsub.f32 %v717_v37, %v725_v54 }
 0x246   : > { %v731_v56 = vmul.f32 1.442695, %v729_v55 }
 0x248   : > { %1372 = vpow2.f32 %v731_v56  ;;  %v990_v56 = vld [vmem:[#allocation11 + $0x18] sm:$0xff] }
 0x249   : > { %1013 = vmatpush.msra.mxu0 %v990_v56 }
 0x24b   : > { %v728_v57 = vpop.xlane.xlu0 %727 }
 0x24c   : > { %v730_v58 = vsub.f32 %v720_v42, %v728_v57  ;;  %v989_v57 = vld [vmem:[#allocation11 + $0x10] sm:$0xff] }
 0x24d   : > { %1014 = vmatpush.msra.mxu0 %v989_v57 }
 0x24e   : > { %v1373_v59 = vpop.eup %1372  ;;  %v733_v60 = vmul.f32 1.442695, %v730_v58  ;;  %v988_v58 = vld [vmem:[#allocation11 + $0x8] sm:$0xff] }
 0x24f   : > { %1225 = vmatmul.msk.f32.vlgmr.msrb.gmra.mxu3 %vm604_vm2, %v1373_v59  ;;  %v735_v61 = vsel %vm604_vm2, %v1373_v59, 0.0  ;;  %1015 = vmatpush.msra.mxu0 %v988_v58  ;;  %v987_v59 = vld [vmem:[#allocation11] sm:$0xff] }
 0x250   : > { %1374 = vpow2.f32 %v733_v60  ;;  %736 = vadd.xlane.f32.xlu2 %v735_v61 }
 0x251   : > { %1016 = vmatpush.msra.mxu0 %v987_v59 }
 0x254   : > { %v904_v62 = vpop.xlane.xlu2 %903 }
 0x255   : > { %v908_v63 = vsub.f32 %v896_v47, %v904_v62  ;;  %v1968_v0 = vpop.f32.mrf.mxu1 }
 0x256   : > { %v1375_v1 = vpop.eup %1374 }
 0x257   : > { %v910_v2 = vmul.f32 1.442695, %v908_v63  ;;  %1226 = vmatmul.msk.f32.gmra.mxu3 %vm604_vm2, %v1375_v1  ;;  %v738_v17 = vsel %vm604_vm2, %v1375_v1, 0.0 }
 0x259   : > { %1376 = vpow2.f32 %v910_v2 }
 0x25c   : > { %v907_v3 = vpop.xlane.xlu0 %906 }
 0x25d   : > { %v909_v4 = vsub.f32 %v899_v51, %v907_v3  ;;  %v1971_v5 = vpop.f32.mrf.mxu1 }
 0x25f   : > { %v1377_v6 = vpop.eup %1376  ;;  %v912_v7 = vmul.f32 1.442695, %v909_v4 }
 0x260   : > { %v914_v8 = vsel %vm604_vm2, %v1377_v6, 0.0 }
 0x261   : > { %1378 = vpow2.f32 %v912_v7  ;;  %915 = vadd.xlane.f32.xlu2 %v914_v8 }
 0x262   : > { %v807_v9 = vpop.f32.mrf.mxu0 }
 0x263   : > { %v813_v10 = vsel %vm604_vm2, %v807_v9, -inf }
 0x264   : > { %814 = vmax.xlane.f32.xlu1 %v813_v10 }
 0x265   : > { %v810_v11 = vpop.f32.mrf.mxu1 }
 0x266   : > { %v816_v12 = vsel %vm604_vm2, %v810_v11, -inf }
 0x267   : > { %v1379_v13 = vpop.eup %1378  ;;  %817 = vmax.xlane.f32.xlu0 %v816_v12 }
 0x268   : > { %v917_v14 = vsel %vm604_vm2, %v1379_v13, 0.0 }
 0x269   : > { %918 = vadd.xlane.f32.xlu2 %v917_v14 }
 0x271   : > { %650 = vadd.xlane.f32.xlu2 %v649_v15 }
 0x279   : > { %653 = vadd.xlane.f32.xlu2 %v652_v16 }
 0x27b   : > { %831 = vrot.lane.b32.xlu0 %v1942_v23, %s1688_s25 }
 0x27d   : > { %920 = vrot.lane.b32.xlu1 %v1942_v23, %s1686_s24  ;;  %s1027_s24 = scalar_lea.sflag [#allocation4], %s1886_s28 }
 0x2a5   : > { %739 = vadd.xlane.f32.xlu0 %v738_v17 }
 0x2c3   : > { %v737_v30 = vpop.xlane.xlu2 %736 }
 0x2d2   : > { %v768_v31 = vpop.f32.mrf.mxu3 }
 0x2d4   : > { %v916_v38 = vpop.xlane.xlu2 %915 }
 0x2d7   : > { %v815_v18 = vpop.xlane.xlu1 %814 }
 0x2d8   : > { %v819_v19 = vsub.f32 %v807_v9, %v815_v18 }
 0x2da   : > { %v821_v20 = vmul.f32 1.442695, %v819_v19  ;;  %v818_v21 = vpop.xlane.xlu0 %817  ;;  %v771_v36 = vpop.f32.mrf.mxu3 }
 0x2db   : > { %v820_v22 = vsub.f32 %v810_v11, %v818_v21 }
 0x2dc   : > { %1380 = vpow2.f32 %v821_v20  ;;  %v919_v39 = vpop.xlane.xlu2 %918 }
 0x2dd   : > { %v823_v24 = vmul.f32 1.442695, %v820_v22 }
 0x2df   : > { %1382 = vpow2.f32 %v823_v24 }
 0x2e0   : > { %1384 = vrcp.f32 %v737_v30 }
 0x2e2   : > { %v1381_v25 = vpop.eup %1380 }
 0x2e3   : > { %v825_v26 = vsel %vm604_vm2, %v1381_v25, 0.0 }
 0x2e4   : > { %826 = vadd.xlane.f32.xlu1 %v825_v26  ;;  %v651_v40 = vpop.xlane.xlu2 %650 }
 0x2e5   : > { %v1383_v27 = vpop.eup %1382 }
 0x2e6   : > { %v828_v28 = vsel %vm604_vm2, %v1383_v27, 0.0  ;;  %v1385_v32 = vpop.eup %1384 }
 0x2e7   : > { %829 = vadd.xlane.f32.xlu2 %v828_v28  ;;  %v776_v33 = vmul.f32 %v1385_v32, %v768_v31 }
 0x2ec   : > { %v654_v41 = vpop.xlane.xlu2 %653 }
 0x2ed   : > { %v832_v23 = vpop.permute.xlu0 %831 }
 0x2ee   : > { %855 = vmatpush.msrb.mxu1 %v832_v23 }
 0x2ef   : > { %v921_v29 = vpop.permute.xlu1 %920  ;;  %1230 = vmatmul.msk.f32.vlgmr.msrb.gmra.mxu1 %vm604_vm2, %v1381_v25 }
 0x2f0   : > { %944 = vmatpush.msra.mxu3 %v921_v29 }
 0x2f1   : > { %1235 = vmatmul.msk.f32.vlgmr.msra.gmra.mxu3 %vm604_vm2, %v1377_v6 }
 0x2f7   : > { %1231 = vmatmul.msk.f32.gmra.mxu1 %vm604_vm2, %v1383_v27 }
 0x2f9   : > { %1236 = vmatmul.msk.f32.gmra.mxu3 %vm604_vm2, %v1379_v13  ;;  %v1367_v13 = vld [vmem:[%s2055_s9] ss:$0 sm:$0xff] }
 0x2fd   : > { %958 = vrot.lane.b32.xlu1 %v776_v33, %s1689_s11 }
 0x318   : > { %v740_v34 = vpop.xlane.xlu0 %739 }
 0x319   : > { %1386 = vrcp.f32 %v740_v34 }
 0x31f   : > { %v1387_v35 = vpop.eup %1386 }
 0x320   : > { %v777_v37 = vmul.f32 %v1387_v35, %v771_v36 }
 0x322   : > { %960 = vrot.lane.b32.xlu1 %v777_v37, %s1689_s11 }
 0x357   : > { %v827_v42 = vpop.xlane.xlu1 %826 }
 0x358   : > { %1388 = vrcp.f32 %v827_v42 }
 0x359   : > { %1390 = vrcp.f32 %v916_v38 }
 0x35a   : > { %v830_v43 = vpop.xlane.xlu2 %829 }
 0x35b   : > { %1392 = vrcp.f32 %v830_v43 }
 0x35c   : > { %1394 = vrcp.f32 %v919_v39 }
 0x35d   : > { %1396 = vrcp.f32 %v651_v40 }
 0x35e   : > { %v1389_v44 = vpop.eup %1388  ;;  %1398 = vrcp.f32 %v654_v41 }
 0x35f   : > { %v1391_v47 = vpop.eup %1390 }
 0x361   : > { %v1393_v48 = vpop.eup %1392 }
 0x362   : > { %v1395_v53 = vpop.eup %1394 }
 0x363   : > { %v1397_v60 = vpop.eup %1396 }
 0x364   : > { %v686_v63 = vmul.f32 %v1397_v60, %v1968_v0  ;;  %v1399_v6 = vpop.eup %1398 }
 0x365   : > { %v687_v8 = vmul.f32 %v1399_v6, %v1971_v5 }
 0x36c   : > { %v857_v45 = vpop.f32.mrf.mxu1 }
 0x36d   : > { %v865_v46 = vmul.f32 %v1389_v44, %v857_v45 }
 0x36f   : > { %966 = vrot.lane.b32.xlu2 %v865_v46, %s1690_s20  ;;  %v959_v62 = vpop.permute.xlu1 %958 }
 0x370   : > { %v980_v1 = vsel %vm604_vm2, %v686_v63, %v959_v62 }
 0x374   : > { %v860_v49 = vpop.f32.mrf.mxu1  ;;  %v946_v50 = vpop.f32.mrf.mxu3 }
 0x375   : > { %v866_v51 = vmul.f32 %v1393_v48, %v860_v49  ;;  %v954_v52 = vmul.f32 %v1391_v47, %v946_v50 }
 0x377   : > { %974 = vrot.lane.b32.xlu0 %v954_v52, %s1691_s4  ;;  %968 = vrot.lane.b32.xlu2 %v866_v51, %s1690_s20 }
 0x37c   : > { %v949_v54 = vpop.f32.mrf.mxu3 }
 0x37d   : > { %v955_v55 = vmul.f32 %v1395_v53, %v949_v54 }
 0x37f   : > { %976 = vrot.lane.b32.xlu0 %v955_v55, %s1691_s4 }
 0x394   : > { %v961_v7 = vpop.permute.xlu1 %960 }
 0x395   : > { %v981_v10 = vsel %vm604_vm2, %v687_v8, %v961_v7 }
 0x3c9   : > { %v967_v61 = vpop.permute.xlu2 %966 }
 0x3ca   : > { %v983_v2 = vsel %vm982_vm3, %v980_v1, %v967_v61 }
 0x3d1   : > { %v969_v9 = vpop.permute.xlu2 %968 }
 0x3d2   : > { %v984_v11 = vsel %vm982_vm3, %v981_v10, %v969_v9 }
 0x3e9   : > { %v975_v3 = vpop.permute.xlu0 %974 }
 0x3ea   : > { %v985_v4 = vsel %vm553_vm0, %v983_v2, %v975_v3 }
 0x3eb   : > { %1237 = vmatmul.msk.f32.vlgmr.msra.gmra.mxu0 %vm516_vm1, %v985_v4 }
 0x3f1   : > { %v977_v0 = vpop.permute.xlu0 %976 }
 0x3f2   : > { %v986_v12 = vsel %vm553_vm0, %v984_v11, %v977_v0 }
 0x3f3   : > { %1238 = vmatmul.msk.f32.gmra.mxu0 %vm516_vm1, %v986_v12 }
 0x468   : > { %v1018_v14 = vpop.f32.mrf.mxu0 }
 0x469   : > { %v1019_v15 = vadd.f32 %v1367_v13, %v1018_v14 }
 0x46b   : > { %1024 = vst.msk [vmem:[%s502_s15] sm:$0xff] %vm516_vm1, %v1019_v15 }
 0x470   : > { %v1021_v5 = vpop.f32.mrf.mxu0 }
 0x471   : > { %v1022_v16 = vadd.f32 %v1367_v13, %v1021_v5 }
 0x473   : > { %1025 = vst.msk [vmem:[%s502_s15 + $0x8] sm:$0xff] %vm516_vm1, %v1022_v16 }
 0x474   : > { %1607 = shalt.err (!%p1604_p0)
}
 0x475   : > { %s1692_s28 = smov 128  }
 0x476   : > { %1267 = dma.vmem_to_hbm [thread:$0]  (%p1857_p7), %s1042_s29, 256, %s1044_s30, %s1027_s24, %s1692_s28, %s1692_s28, %s1689_s11  }
 0x477 PF: > { %s2091_s4 = sld [smem:[#allocation20_spill]]  ;;  %p1290_p3 = pnand %p1199_p11, %p1793_p6 }
 0x479   : > { %p1291_p5 = pneg %p1290_p3 }
 0x47d   : > { %s1058_s10 = sand.u32 1, %s2091_s4  }
 0x47e   : > { %s1059_s23 = scalar_lea.sflag [#allocation4], %s1058_s10 }
 0x47f   : > { %1653 = dma.done.wait (%p1291_p5), %s1059_s23, 256  }
 0x480   : > { %1655 = vsyncadd (%p1291_p5), %s1059_s23, 4294967040  ;;  %s31_s18 = sadd.s32 1, %s1678_s18   ;;  %s2093_s15 = sld [smem:[#allocation21_spill]] }
 0x481   : > { %p28_p9 = scmp.ge.s32.totalorder %s31_s18, 4   ;;  %s2094_s8 = sld [smem:[#allocation25_spill]] }
 0x482   : > { %s2095_s11 = sld [smem:[#allocation23_spill]]  ;;  %s2096_s13 = smov %s1662_s14 }
 0x483   : > { %s2099_s16 = smov %s1674_s17 }
 0x484   :  { %30 = sbr.rel (!%p28_p9) target bundleno = 16 (0x10), region = 134 }
 0x486   : > { %s2097_s14 = smov %s2093_s15 }
 0x487   : > { %s2098_s15 = smov %s2094_s8 }
 0x488   : > { %s2100_s17 = smov %s2095_s11 }
 0x489   :  { %1065 = vsyncpa [#allocation3], 1 }
 0x48a   :  { %1067 = vsyncpa [#allocation3 + $0x1], 1 }
 0x48b   :  { %1068 = vsyncpa [#allocation6], 1 }
 0x48c   :  { %1070 = vsyncpa [#allocation6 + $0x1], 1 }
 0x48d   :  { %1071 = vsyncpa [#allocation9], 1 }
 0x48e   :  { %1072 = vsyncpa [#allocation12], 1 }
 0x48f   :  { %1073 = vsyncpa [#allocation4], 1 }
 0x490   :  { %1075 = vsyncpa [#allocation4 + $0x1], 1 }

</bundles_post_ra>
